<compile_context>
chip_gen: v6e
topology: v6e:2x2x1
jax: 0.10.0
libtpu: 0.0.40
codegen_flags: <defaults>
</compile_context>

<pallas_src>
import math

import jax
import jax.numpy as jnp
from jax import lax
from jax.experimental import pallas as pl
from jax.experimental.pallas import tpu as pltpu


def _round_up(x: int, m: int) -> int:
    return (x + m - 1) // m * m


def _choose_lane_fold(T: int, F: int, max_k: int = 16) -> int:
    """Pick k (dividing T) that maximizes lane utilization of the folded dim k*F."""
    if F % 128 == 0:
        return 1
    best_k = 1
    best_util = F / _round_up(F, 128)
    for k in range(2, max_k + 1):
        if T % k != 0:
            continue
        util = (k * F) / _round_up(k * F, 128)
        if util > best_util + 1e-9:
            best_k, best_util = k, util
    return best_k


def _vmem_budget():
    """(target padded block bytes, vmem_limit_bytes) for the local TPU generation."""
    try:
        cap = int(pltpu.get_tpu_info().vmem_capacity_bytes)
    except Exception:  # noqa: BLE001 - fall back to the most conservative (v7x) budget
        cap = 64 * 1024 * 1024
    if cap <= 64 * 1024 * 1024:                      # v7x-class: 64 MiB per TensorCore
        return 5 * 1024 * 1024, 48 * 1024 * 1024
    return 8 * 1024 * 1024, 96 * 1024 * 1024         # v5e / v6e: 128 MiB


def _choose_block_b(B: int, padded_example_bytes: int, target_block_bytes: int) -> int:
    bb = max(1, target_block_bytes // max(padded_example_bytes, 1))
    bb = min(bb, B)
    if B > 1:
        # Keep at least 2 grid steps so both TensorCores get work on v7x
        # (a single extra tiny step is harmless on 1-TC v5e/v6e).
        bb = min(bb, (B + 1) // 2)
    return max(int(bb), 1)


def _make_specaug_kernel(bb, Tb, k, F, n_time_masks, n_freq_masks, inv_tf):
    """One (bb, Tb, k*F) block of `bb` whole examples per grid step."""
    kF = k * F

    def kernel(x_ref, params_ref, out_ref):
        b0 = pl.program_id(0) * bb

        x = x_ref[...]                                              # (bb, Tb, kF)

        # Per-example mean over the full *un-masked* (T, F) matrix (fill value,
        # matching the reference which computes the mean before any masking).
        row_sum = jnp.sum(x.astype(jnp.float32), axis=2, keepdims=True)   # (bb, Tb, 1)
        mean = jnp.sum(row_sum, axis=1, keepdims=True) * inv_tf           # (bb, 1, 1)

        def param(col):
            # (bb, 1, 1) slice of the resident per-example interval table.
            return params_ref[pl.ds(b0, bb), :, col:col + 1]

        col = 0

        # ---- time masks, evaluated at per-frame resolution (bb, Tb, k) ----
        if n_time_masks > 0:
            tb_idx = lax.broadcasted_iota(jnp.int32, (bb, Tb, k), 1)
            c_idx = lax.broadcasted_iota(jnp.int32, (bb, Tb, k), 2)
            t = tb_idx * k + c_idx                                  # global frame index
            tmask = jnp.zeros((bb, Tb, k), dtype=jnp.bool_)
            for _ in range(n_time_masks):
                s, e = param(col), param(col + 1)
                tmask = tmask | ((t >= s) & (t < e))
                col += 2
        else:
            tmask = jnp.zeros((bb, Tb, k), dtype=jnp.bool_)

        # ---- frequency masks, evaluated at (bb, 1, kF) ----
        if n_freq_masks > 0:
            j = lax.broadcasted_iota(jnp.int32, (bb, 1, kF), 2)     # lane index
            c_of_j = jnp.zeros((bb, 1, kF), dtype=jnp.int32)
            for c in range(1, k):                                   # j // F without a div
                c_of_j = c_of_j + (j >= c * F).astype(jnp.int32)
            f = j - c_of_j * F                                      # freq-bin index
            fmask = jnp.zeros((bb, 1, kF), dtype=jnp.bool_)
            for _ in range(n_freq_masks):
                s, e = param(col), param(col + 1)
                fmask = fmask | ((f >= s) & (f < e))
                col += 2
        else:
            fmask = jnp.zeros((bb, 1, kF), dtype=jnp.bool_)

        # ---- expand the per-frame time mask to the folded lane axis (MXU) ----
        # expand[b, c, j] = 1 iff lane j belongs to fold position c (j // F == c);
        # the matmul keeps full-shape VPU work tiny and the MXU is otherwise idle.
        c3 = lax.broadcasted_iota(jnp.int32, (bb, k, kF), 1)
        j3 = lax.broadcasted_iota(jnp.int32, (bb, k, kF), 2)
        expand = ((j3 >= c3 * F) & (j3 < c3 * F + F)).astype(jnp.float32)
        t_exp = jnp.einsum("btc,bcj->btj", tmask.astype(jnp.float32), expand,
                           preferred_element_type=jnp.float32)      # (bb, Tb, kF)

        masked = (t_exp > 0.5) | fmask
        out_ref[...] = jnp.where(masked, mean.astype(x.dtype), x)

    return kernel


def spec_augment(features,
                 key,
                 *,
                 time_warp_factor=80,
                 num_feature_masks: int = 2,
                 features_mask_size: int = 27,
                 num_frame_masks: int = 10,
                 frames_mask_size: int = 100,
                 max_frames_mask_fraction: float = 0.15,
                 p: float = 0.9):
    """JAX/Pallas equivalent of SpecAugment.forward (supervision_segments=None).

    Returns (augmented_features (B, T, F), time_masks (B, T) bool).

    Performance contract: the kernel writes its output in place of `features`
    (input/output aliasing); callers should donate `features` at the jit
    boundary (jax.jit(..., donate_argnums=...)) to avoid a defensive HBM copy.
    """
    B, T, F = features.shape
    itemsize = jnp.dtype(features.dtype).itemsize

    # TODO(synk): time warping (time_warp_impl) not implemented; matches the
    # warp=False / time_warp_factor < 1 path of the reference module.
    del time_warp_factor

    # ---- python-level mask sizing (identical to _forward_single) ----
    if num_frame_masks > 0:
        max_tot_mask_frames = max_frames_mask_fraction * T
        n_time_masks = min(num_frame_masks,
                           math.ceil(max_tot_mask_frames / frames_mask_size))
        max_mask_frames = int(min(frames_mask_size,
                                  max_tot_mask_frames // n_time_masks))
        max_mask_frames = max(max_mask_frames, 1)   # guard randint validity only
    else:
        n_time_masks = 0
        max_mask_frames = 1
    n_freq_masks = num_feature_masks

    # ---- random interval generation (torch.rand / torch.randint semantics:
    #      width in [0, size), start = floor(u * (dim - width)), end = start+width)
    k_apply, k_twid, k_tpos, k_fwid, k_fpos = jax.random.split(key, 5)
    apply = jax.random.uniform(k_apply, (B,)) <= p                 # (B,) bool

    if n_time_masks > 0:
        twid = jax.random.randint(k_twid, (B, n_time_masks), 0, max_mask_frames)
        tstart = jnp.floor(jax.random.uniform(k_tpos, (B, n_time_masks))
                           * (T - twid).astype(jnp.float32)).astype(jnp.int32)
        tend = tstart + twid.astype(jnp.int32)
        t_idx = jnp.arange(T, dtype=jnp.int32)[None, None, :]
        time_mask = jnp.any((t_idx >= tstart[..., None])
                            & (t_idx < tend[..., None]), axis=1)   # (B, T)
        time_mask = time_mask & apply[:, None]
        tstart = jnp.where(apply[:, None], tstart, 0)
        tend = jnp.where(apply[:, None], tend, 0)
        t_params = jnp.stack([tstart, tend], axis=2).reshape(B, 2 * n_time_masks)
    else:
        time_mask = jnp.zeros((B, T), dtype=bool)
        t_params = jnp.zeros((B, 0), dtype=jnp.int32)

    if n_freq_masks > 0:
        fwid = jax.random.randint(k_fwid, (B, n_freq_masks), 0, features_mask_size)
        fstart = jnp.floor(jax.random.uniform(k_fpos, (B, n_freq_masks))
                           * (F - fwid).astype(jnp.float32)).astype(jnp.int32)
        fend = fstart + fwid.astype(jnp.int32)
        fstart = jnp.where(apply[:, None], fstart, 0)
        fend = jnp.where(apply[:, None], fend, 0)
        f_params = jnp.stack([fstart, fend], axis=2).reshape(B, 2 * n_freq_masks)
    else:
        f_params = jnp.zeros((B, 0), dtype=jnp.int32)

    n_params = 2 * (n_time_masks + n_freq_masks)
    if n_params == 0:
        return features, time_mask                                  # nothing to mask

    params = jnp.concatenate([t_params, f_params], axis=1).astype(jnp.int32)  # (B, P)

    # ---- lane-dense fold: (B, T, F) -> (B, T//k, k*F); free on contiguous HBM ----
    k = _choose_lane_fold(T, F)
    Tb, kF = T // k, k * F
    x = features.reshape(B, Tb, kF)

    # ---- block sizing against the *padded* VMEM footprint ----
    sub_mult = {4: 8, 2: 16, 1: 32}.get(itemsize, 8)
    padded_example_bytes = _round_up(Tb, sub_mult) * _round_up(kF, 128) * itemsize
    target_block_bytes, vmem_limit = _vmem_budget()
    bb = _choose_block_b(B, padded_example_bytes, target_block_bytes)
    num_blocks = pl.cdiv(B, bb)
    b_pad = num_blocks * bb

    # Per-example interval table, resident in VMEM for the whole kernel; padded so
    # the in-kernel pl.ds slice of the (possibly uneven) tail block stays in bounds.
    params = jnp.pad(params, ((0, b_pad - B), (0, 0))).reshape(b_pad, 1, n_params)

    kernel = _make_specaug_kernel(bb, Tb, k, F, n_time_masks, n_freq_masks,
                                  1.0 / float(T * F))

    cost = pl.CostEstimate(
        flops=(8 + 2 * k) * B * T * F,
        transcendentals=0,
        bytes_accessed=2 * B * T * F * itemsize + b_pad * n_params * 4,
    )

    out = pl.pallas_call(
        kernel,
        out_shape=jax.ShapeDtypeStruct((B, Tb, kF), features.dtype),
        grid=(num_blocks,),
        in_specs=[
            pl.BlockSpec((bb, Tb, kF), lambda i: (i, 0, 0)),
            pl.BlockSpec((b_pad, 1, n_params), lambda i: (0, 0, 0)),  # resident
        ],
        out_specs=pl.BlockSpec((bb, Tb, kF), lambda i: (i, 0, 0)),
        compiler_params=pltpu.CompilerParams(
            dimension_semantics=("parallel",),
            vmem_limit_bytes=vmem_limit,
        ),
        cost_estimate=cost,
        input_output_aliases={0: 0},
    )(x, params)

    return out.reshape(B, T, F), time_mask


if __name__ == "__main__":
    root = jax.random.PRNGKey(0)
    k_feat, k_aug = jax.random.split(root)

    B, T, F = 2, 48, 32
    features = jax.random.normal(k_feat, (B, T, F), dtype=jnp.float32)

    # Donate `features` so the in-place output aliasing does not force a copy.
    aug_fn = jax.jit(spec_augment, donate_argnums=(0,))
    out, time_masks = aug_fn(features, k_aug)
    out = jax.block_until_ready(out)
    time_masks = jax.block_until_ready(time_masks)

    assert out.shape == (B, T, F) and out.dtype == jnp.float32
    assert time_masks.shape == (B, T) and time_masks.dtype == jnp.bool_
    assert bool(jnp.all(jnp.isfinite(out)))

    print("KERNEL_OK")
</pallas_src>

<mosaic_0001>
module attributes {stable_mosaic.version = 11 : i64} {
  func.func @kernel(%arg0: i32, %arg1: memref<1x12x128xf32, #tpu.memory_space<vmem>>, %arg2: memref<2x1x6xi32, #tpu.memory_space<vmem>>, %arg3: memref<1x12x128xf32, #tpu.memory_space<vmem>>) attributes {dimension_semantics = [#tpu.dimension_semantics<parallel>], iteration_bounds = array<i64: 2>, scalar_prefetch = 0 : i64, scratch_operands = 0 : i64, tpu.core_type = #tpu.core_type<tc>, window_params = [{transform_indices = @transform_0, window_bounds = array<i64: 1, 12, 128>}, {pipeline_mode = #tpu.pipeline_mode<synchronous>, transform_indices = @transform_1, window_bounds = array<i64: 2, 1, 6>}, {transform_indices = @transform_2, window_bounds = array<i64: 1, 12, 128>}]} {
    %c1_i32 = arith.constant 1 : i32
    %0 = arith.muli %arg0, %c1_i32 : i32
    %c0 = arith.constant 0 : index
    %c0_0 = arith.constant 0 : index
    %c0_1 = arith.constant 0 : index
    %1 = vector.load %arg1[%c0, %c0_0, %c0_1] : memref<1x12x128xf32, #tpu.memory_space<vmem>>, vector<1x12x128xf32>
    %cst = arith.constant dense<0.000000e+00> : vector<1x12xf32>
    %2 = vector.multi_reduction <add>, %1, %cst [2] : vector<1x12x128xf32> to vector<1x12xf32>
    %3 = vector.shape_cast %2 : vector<1x12xf32> to vector<1x12x1xf32>
    %cst_2 = arith.constant dense<0.000000e+00> : vector<1x1xf32>
    %4 = vector.multi_reduction <add>, %3, %cst_2 [1] : vector<1x12x1xf32> to vector<1x1xf32>
    %5 = vector.shape_cast %4 : vector<1x1xf32> to vector<1x1x1xf32>
    %cst_3 = arith.constant 6.51041686E-4 : f32
    %6 = vector.broadcast %cst_3 : f32 to vector<1x1x1xf32>
    %7 = arith.mulf %5, %6 : vector<1x1x1xf32>
    %8 = tpu.iota {dimensions = array<i32: 1>} : vector<1x12x4xi32>
    %9 = tpu.iota {dimensions = array<i32: 2>} : vector<1x12x4xi32>
    %c4_i32 = arith.constant 4 : i32
    %10 = vector.broadcast %c4_i32 : i32 to vector<1x12x4xi32>
    %11 = arith.muli %8, %10 : vector<1x12x4xi32>
    %12 = arith.addi %11, %9 : vector<1x12x4xi32>
    %false = arith.constant false
    %13 = vector.broadcast %false : i1 to vector<1x12x4xi1>
    %14 = arith.index_cast %0 : i32 to index
    %c0_4 = arith.constant 0 : index
    %c0_5 = arith.constant 0 : index
    %15 = vector.load %arg2[%14, %c0_4, %c0_5] : memref<2x1x6xi32, #tpu.memory_space<vmem>>, vector<1x1x1xi32>
    %16 = arith.index_cast %0 : i32 to index
    %c0_6 = arith.constant 0 : index
    %c1 = arith.constant 1 : index
    %17 = vector.load %arg2[%16, %c0_6, %c1] : memref<2x1x6xi32, #tpu.memory_space<vmem>>, vector<1x1x1xi32>
    %18 = vector.broadcast %15 : vector<1x1x1xi32> to vector<1x12x4xi32>
    %19 = arith.cmpi sge, %12, %18 : vector<1x12x4xi32>
    %20 = vector.broadcast %17 : vector<1x1x1xi32> to vector<1x12x4xi32>
    %21 = arith.cmpi slt, %12, %20 : vector<1x12x4xi32>
    %22 = arith.andi %19, %21 : vector<1x12x4xi1>
    %23 = arith.ori %13, %22 : vector<1x12x4xi1>
    %24 = tpu.iota {dimensions = array<i32: 2>} : vector<1x1x128xi32>
    %c0_i32 = arith.constant 0 : i32
    %25 = vector.broadcast %c0_i32 : i32 to vector<1x1x128xi32>
    %c32_i32 = arith.constant 32 : i32
    %26 = vector.broadcast %c32_i32 : i32 to vector<1x1x128xi32>
    %27 = arith.cmpi sge, %24, %26 : vector<1x1x128xi32>
    %28 = arith.extui %27 : vector<1x1x128xi1> to vector<1x1x128xi32>
    %29 = arith.addi %25, %28 : vector<1x1x128xi32>
    %c64_i32 = arith.constant 64 : i32
    %30 = vector.broadcast %c64_i32 : i32 to vector<1x1x128xi32>
    %31 = arith.cmpi sge, %24, %30 : vector<1x1x128xi32>
    %32 = arith.extui %31 : vector<1x1x128xi1> to vector<1x1x128xi32>
    %33 = arith.addi %29, %32 : vector<1x1x128xi32>
    %c96_i32 = arith.constant 96 : i32
    %34 = vector.broadcast %c96_i32 : i32 to vector<1x1x128xi32>
    %35 = arith.cmpi sge, %24, %34 : vector<1x1x128xi32>
    %36 = arith.extui %35 : vector<1x1x128xi1> to vector<1x1x128xi32>
    %37 = arith.addi %33, %36 : vector<1x1x128xi32>
    %c32_i32_7 = arith.constant 32 : i32
    %38 = vector.broadcast %c32_i32_7 : i32 to vector<1x1x128xi32>
    %39 = arith.muli %37, %38 : vector<1x1x128xi32>
    %40 = arith.subi %24, %39 : vector<1x1x128xi32>
    %false_8 = arith.constant false
    %41 = vector.broadcast %false_8 : i1 to vector<1x1x128xi1>
    %42 = arith.index_cast %0 : i32 to index
    %c0_9 = arith.constant 0 : index
    %c2 = arith.constant 2 : index
    %43 = vector.load %arg2[%42, %c0_9, %c2] : memref<2x1x6xi32, #tpu.memory_space<vmem>>, vector<1x1x1xi32>
    %44 = arith.index_cast %0 : i32 to index
    %c0_10 = arith.constant 0 : index
    %c3 = arith.constant 3 : index
    %45 = vector.load %arg2[%44, %c0_10, %c3] : memref<2x1x6xi32, #tpu.memory_space<vmem>>, vector<1x1x1xi32>
    %46 = vector.broadcast %43 : vector<1x1x1xi32> to vector<1x1x128xi32>
    %47 = arith.cmpi sge, %40, %46 : vector<1x1x128xi32>
    %48 = vector.broadcast %45 : vector<1x1x1xi32> to vector<1x1x128xi32>
    %49 = arith.cmpi slt, %40, %48 : vector<1x1x128xi32>
    %50 = arith.andi %47, %49 : vector<1x1x128xi1>
    %51 = arith.ori %41, %50 : vector<1x1x128xi1>
    %52 = arith.index_cast %0 : i32 to index
    %c0_11 = arith.constant 0 : index
    %c4 = arith.constant 4 : index
    %53 = vector.load %arg2[%52, %c0_11, %c4] : memref<2x1x6xi32, #tpu.memory_space<vmem>>, vector<1x1x1xi32>
    %54 = arith.index_cast %0 : i32 to index
    %c0_12 = arith.constant 0 : index
    %c5 = arith.constant 5 : index
    %55 = vector.load %arg2[%54, %c0_12, %c5] : memref<2x1x6xi32, #tpu.memory_space<vmem>>, vector<1x1x1xi32>
    %56 = vector.broadcast %53 : vector<1x1x1xi32> to vector<1x1x128xi32>
    %57 = arith.cmpi sge, %40, %56 : vector<1x1x128xi32>
    %58 = vector.broadcast %55 : vector<1x1x1xi32> to vector<1x1x128xi32>
    %59 = arith.cmpi slt, %40, %58 : vector<1x1x128xi32>
    %60 = arith.andi %57, %59 : vector<1x1x128xi1>
    %61 = arith.ori %51, %60 : vector<1x1x128xi1>
    %62 = tpu.iota {dimensions = array<i32: 1>} : vector<1x4x128xi32>
    %63 = tpu.iota {dimensions = array<i32: 2>} : vector<1x4x128xi32>
    %c32_i32_13 = arith.constant 32 : i32
    %64 = vector.broadcast %c32_i32_13 : i32 to vector<1x4x128xi32>
    %65 = arith.muli %62, %64 : vector<1x4x128xi32>
    %66 = arith.cmpi sge, %63, %65 : vector<1x4x128xi32>
    %c32_i32_14 = arith.constant 32 : i32
    %67 = vector.broadcast %c32_i32_14 : i32 to vector<1x4x128xi32>
    %68 = arith.muli %62, %67 : vector<1x4x128xi32>
    %c32_i32_15 = arith.constant 32 : i32
    %69 = vector.broadcast %c32_i32_15 : i32 to vector<1x4x128xi32>
    %70 = arith.addi %68, %69 : vector<1x4x128xi32>
    %71 = arith.cmpi slt, %63, %70 : vector<1x4x128xi32>
    %72 = arith.andi %66, %71 : vector<1x4x128xi1>
    %73 = arith.extui %72 : vector<1x4x128xi1> to vector<1x4x128xi32>
    %74 = arith.sitofp %73 : vector<1x4x128xi32> to vector<1x4x128xf32>
    %75 = arith.extui %23 : vector<1x12x4xi1> to vector<1x12x4xi32>
    %76 = arith.sitofp %75 : vector<1x12x4xi32> to vector<1x12x4xf32>
    "tpu.trace_start"() <{level = 10 : i32, message = "btc,bcj->btj"}> : () -> ()
    %cst_16 = arith.constant dense<0.000000e+00> : vector<1x12x128xf32>
    %77 = tpu.matmul %76, %74, %cst_16 {dimension_numbers = #tpu.dot_dimension_numbers<[2], [1], [1], [2], [0, 0, 0, 1, 1, 2], [0], [0]>} : vector<1x12x4xf32>, vector<1x4x128xf32>, vector<1x12x128xf32> -> vector<1x12x128xf32>
    %cst_17 = arith.constant 5.000000e-01 : f32
    "tpu.trace_stop"() : () -> ()
    %78 = vector.broadcast %cst_17 : f32 to vector<1x12x128xf32>
    %79 = arith.cmpf ogt, %77, %78 : vector<1x12x128xf32>
    %80 = vector.broadcast %61 : vector<1x1x128xi1> to vector<1x12x128xi1>
    %81 = arith.ori %79, %80 : vector<1x12x128xi1>
    %82 = vector.shape_cast %7 : vector<1x1x1xf32> to vector<1x1x1xf32>
    %83 = vector.broadcast %82 : vector<1x1x1xf32> to vector<1x12x128xf32>
    %84 = arith.select %81, %83, %1 : vector<1x12x128xi1>, vector<1x12x128xf32>
    %c0_18 = arith.constant 0 : index
    %c0_19 = arith.constant 0 : index
    %c0_20 = arith.constant 0 : index
    %85 = vector.load %arg3[%c0_18, %c0_19, %c0_20] : memref<1x12x128xf32, #tpu.memory_space<vmem>>, vector<1x12x128xf32>
    tpu.vector_store %arg3[%c0_18, %c0_19, %c0_20], %84 {strides = array<i32>} : memref<1x12x128xf32, #tpu.memory_space<vmem>>, vector<1x12x128xf32>,
    return
  }
  func.func @transform_0(%arg0: i32) -> (i32, i32, i32) {
    %c0_i32 = arith.constant 0 : i32
    %c0_i32_0 = arith.constant 0 : i32
    %c0_i32_1 = arith.constant 0 : i32
    return %arg0, %c0_i32, %c0_i32_0 : i32, i32, i32
  }
  func.func @transform_1(%arg0: i32) -> (i32, i32, i32) {
    %c0_i32 = arith.constant 0 : i32
    %c0_i32_0 = arith.constant 0 : i32
    %c0_i32_1 = arith.constant 0 : i32
    %c0_i32_2 = arith.constant 0 : i32
    return %c0_i32, %c0_i32_0, %c0_i32_1 : i32, i32, i32
  }
  func.func @transform_2(%arg0: i32) -> (i32, i32, i32) {
    %c0_i32 = arith.constant 0 : i32
    %c0_i32_0 = arith.constant 0 : i32
    %c0_i32_1 = arith.constant 0 : i32
    return %arg0, %c0_i32, %c0_i32_0 : i32, i32, i32
  }
}

</mosaic_0001>

<bundles_post_ra>
// kernel: spec_augment.3
= control target key start
LH: loop header
LB: loop body
LE: loop exit
PB: predicated region body
PF: predicated region fallthrough
CT: control target
= control target key end

     0   :  { %s474_s9 = smov 0   ;;  %s521_s0 = inlined_call_operand.vmem [shape: f32[2,12,128], index: 0, kind: input, shape index: {}, may-alias: {0,2}]   ;;  %s522_s1 = inlined_call_operand.vmem [shape: s32[2,1,6], index: 1, kind: input, shape index: {}]   ;;  %s523_s2 = inlined_call_operand.vmem [shape: f32[2,12,128], index: 2, kind: output, shape index: {}, may-alias: {0,2}]  }
   0x1 LB: > { %s480_s10 = sadd.s32 4294967295, %s450_s9   ;;  %p399_p0 = scmp.ge.s32.totalorder %s450_s9, 1  ;;  %s450_s9 = sphi %s474_s9, %s12_s9  }
   0x2   : > { %p112_p1 = scmp.lt.s32.totalorder %s450_s9, 3 }
   0x4   : > { %p113_p2 = pnand %p399_p0, %p112_p1 }
   0x5   : > { %s170_s13 = scalar_lea.vmem (!%p113_p2), %s522_s1, %s480_s10  ;;  %p134_p3 = scmp.lt.s32.totalorder (!%p113_p2), %s480_s10, 1 }
   0x6   : > { %116 = sbr.rel (%p113_p2) target bundleno = 352 (0x160), region = 28 }
   0xb   : > { %v161_v0 = vlaneseq  ;;  %v452_v1 = vmov 0   ;;  %v171_v4 = vld [vmem:[%s170_s13] sm:$0x1]  ;;  %vm148_vm4 = vcmask 1043456   ;;  %v453_v19 = vmov 1   ;;  %s525_s10 = smov (!%p134_p3, %s480_s10), 1 }
   0xc   : > { %437 = vset.pattern.permute.xlu0 %v452_v1  ;;  %v454_v20 = vmov 0.0   ;;  %v455_v22 = vmov 2   ;;  %v456_v23 = vmov 3   ;;  %s412_s14 = sshll.u32 %s525_s10, 4  ;;  %v457_v27 = vmov 4  }
   0xd   : > { %v165_v2 = vand.u32 127, %v161_v0  ;;  %v162_v3 = vshrl.u32 %v161_v0, 7  ;;  %439 = vset.pattern.permute.xlu1 %v455_v22  ;;  %s138_s17 = scalar_lea.vmem %s521_s0, %s412_s14  ;;  %v458_v28 = vmov 5   ;;  %vm244_vm12 = vcmask 31744   ;;  %s143_s20 = scalar_lea.vmem %s523_s2, %s412_s14 }
   0xe   : > { %v503_v24 = vld [vmem:[%s138_s17] sm:$0xff]  ;;  %v145_v25 = vld [vmem:[%s138_s17 + $0x8] sm:$0xf] }
   0xf   : > { %vm188_vm0 = vcmp.ge.s32.totalorder %v165_v2, 32  ;;  %vm190_vm1 = vcmp.ge.s32.totalorder %v165_v2, 64  ;;  %vm193_vm2 = vcmp.ge.s32.totalorder %v165_v2, 96  ;;  %v488_v5 = vsub.s32 0, %v162_v3  ;;  %146 = vadd.xlane.f32.xlu1 %v503_v24 }
  0x10   : > { %v189_v6 = vsel %vm188_vm0, 1, %v452_v1  ;;  %v191_v7 = vsel %vm190_vm1, 1, %v452_v1  ;;  %v194_v8 = vsel %vm193_vm2, 1, %v452_v1  ;;  %v163_v9 = vadd.s32 8, %v162_v3 }
  0x11   : > { %v192_v10 = vadd.s32 %v191_v7, %v189_v6  ;;  %v175_v11 = vrot.slane %v171_v4, %v488_v5  ;;  %v166_v12 = vmul.u32 4, %v162_v3  ;;  %v233_v13 = vmul.u32 32, %v162_v3 }
  0x12   : > { %v167_v14 = vmul.u32 4, %v163_v9  ;;  %v149_v26 = vsel %vm148_vm4, %v145_v25, 0.0 }
  0x13   : > { %v195_v15 = vadd.s32 %v194_v8, %v192_v10  ;;  %177 = vperm.xlu0 %437, %v175_v11   ;;  %v168_v16 = vadd.s32 %v166_v12, %v165_v2  ;;  %vm234_vm3 = vcmp.ge.s32.totalorder %v165_v2, %v233_v13  ;;  %v235_v17 = vadd.s32 32, %v233_v13  ;;  %150 = vadd.xlane.f32.xlu1 %v149_v26 }
  0x14   : > { %v169_v18 = vadd.s32 %v167_v14, %v165_v2 }
  0x15   : > { %vm236_vm5 = vcmp.lt.s32.totalorder %v165_v2, %v235_v17  ;;  %v196_v29 = vmul.u32 32, %v195_v15 }
  0x16   : > { %vm237_vm6 = vmand %vm234_vm3, %vm236_vm5 }
  0x17   : > { %438 = vset.pattern.permute.xlu0 %v453_v19  ;;  %v404_v21 = vsel %vm237_vm6, 1.0, %v454_v20  ;;  %v197_v30 = vsub.s32 %v165_v2, %v196_v29 }
  0x18   : > { %182 = vperm.xlu0 %438, %v175_v11   ;;  %417 = vmatprep.subr.msk.mxu0 %vm148_vm4, %v404_v21 }
  0x19   : > { %418 = vmatpush3.msk.msra.mxu0 %vm148_vm4, %v404_v21 }
  0x1c   : > { %440 = vset.pattern.permute.xlu0 %v456_v23 }
  0x1d   : > { %207 = vperm.xlu0 %440, %v171_v4  }
  0x21   : > { %441 = vset.pattern.permute.xlu0 %v457_v27 }
  0x22   : > { %216 = vperm.xlu0 %441, %v171_v4  }
  0x24   : > { %199 = vperm.xlu1 %439, %v171_v4  }
  0x26   : > { %443 = vset.pattern.permute.xlu0 %v458_v28 }
  0x28   : > { %442 = vset.pattern.permute.xlu1 %v458_v28 }
  0x29   : > { %224 = vperm.xlu1 %442, %v171_v4  }
  0x8e   : > { %v178_v31 = vpop.permute.xlu0 %177 }
  0x8f   : > { %vm180_vm7 = vcmp.ge.s32.totalorder %v169_v18, %v178_v31  ;;  %vm179_vm10 = vcmp.ge.s32.totalorder %v168_v16, %v178_v31 }
  0x93   : > { %v183_v32 = vpop.permute.xlu0 %182 }
  0x94   : > { %vm184_vm8 = vcmp.lt.s32.totalorder %v168_v16, %v183_v32  ;;  %vm185_vm9 = vcmp.lt.s32.totalorder %v169_v18, %v183_v32 }
  0x95   : > { %vm187_vm11 = vmand %vm180_vm7, %vm185_vm9 }
  0x96   : > { %vm186_vm13 = vmand %vm179_vm10, %vm184_vm8  ;;  %v406_v33 = vsel %vm187_vm11, 1.0, %v454_v20 }
  0x97   : > { %v405_v34 = vsel %vm186_vm13, 1.0, %v454_v20 }
  0x98   : > { %419 = vmatprep.mubr.msk.f32.mxu0 %vm244_vm12, %v405_v34  ;;  %v147_v35 = vpop.xlane.xlu1 %146  ;;  %v208_v41 = vpop.permute.xlu0 %207 }
  0x99   : > { %420 = vmatmul.mubr.msk.f32.vlgmr.msra.gmra.mxu0 %vm244_vm12, %v406_v33  ;;  %v212_v47 = vrot.slane %v208_v41, %v488_v5 }
  0x9b   : > { %vm213_vm14 = vcmp.lt.s32.totalorder %v197_v30, %v212_v47 }
  0x9c   : > { %v151_v36 = vpop.xlane.xlu1 %150 }
  0x9d   : > { %v152_v37 = vsel %vm148_vm4, %v151_v36, 0.0  ;;  %v217_v44 = vpop.permute.xlu0 %216 }
  0x9e   : > { %v153_v38 = vadd.f32 %v152_v37, %v147_v35  ;;  %v221_v49 = vrot.slane %v217_v44, %v488_v5 }
  0xa0   : > { %v154_v39 = vrot.slane %v153_v38, 4  ;;  %v200_v42 = vpop.permute.xlu1 %199  ;;  %vm222_vm0 = vcmp.ge.s32.totalorder %v197_v30, %v221_v49 }
  0xa1   : > { %v204_v48 = vrot.slane %v200_v42, %v488_v5 }
  0xa2   : > { %v155_v40 = vadd.f32 %v154_v39, %v153_v38 }
  0xa3   : > { %vm205_vm15 = vcmp.ge.s32.totalorder %v197_v30, %v204_v48 }
  0xa4   : > { %v156_v43 = vrot.slane %v155_v40, 2  ;;  %v225_v45 = vpop.permute.xlu1 %224  ;;  %vm214_vm2 = vmand %vm205_vm15, %vm213_vm14 }
  0xa5   : > { %v229_v50 = vrot.slane %v225_v45, %v488_v5 }
  0xa6   : > { %v157_v46 = vadd.f32 %v156_v43, %v155_v40 }
  0xa7   : > { %vm230_vm1 = vcmp.lt.s32.totalorder %v197_v30, %v229_v50 }
  0xa8   : > { %v158_v51 = vrot.slane %v157_v46, 1  ;;  %vm231_vm3 = vmand %vm222_vm0, %vm230_vm1 }
  0xa9   : > { %vm232_vm4 = vmor %vm214_vm2, %vm231_vm3 }
  0xaa   : > { %v159_v52 = vadd.f32 %v158_v51, %v157_v46 }
  0xac   : > { %v160_v54 = vmul.f32 0.0006510417, %v159_v52 }
 0x159   : > { %v421_v53 = vpop.f32.mrf.mxu0 }
 0x15a   : > { %vm330_vm5 = vcmp.gt.f32.partialorder %v421_v53, 0.5 }
 0x15b   : > { %vm334_vm6 = vmor %vm330_vm5, %vm232_vm4  ;;  %v320_v55 = vpop.f32.mrf.mxu0 }
 0x15c   : > { %v336_v56 = vsel %vm334_vm6, %v160_v54, %v145_v25  ;;  %vm329_vm7 = vcmp.gt.f32.partialorder %v320_v55, 0.5 }
 0x15d   : > { %338 = vst [vmem:[%s143_s20 + $0x8] sm:$0xf] %v336_v56  ;;  %vm333_vm8 = vmor %vm329_vm7, %vm232_vm4 }
 0x15e   : > { %v335_v57 = vsel %vm333_vm8, %v160_v54, %v503_v24 }
 0x15f   : > { %337 = vst [vmem:[%s143_s20] sm:$0xff] %v335_v57 }
 0x160 PF: > { %s12_s9 = sadd.s32 1, %s450_s9  }
 0x161   : > { %p9_p4 = scmp.ge.s32.totalorder %s12_s9, 4  }
 0x163   :  { %11 = sbr.rel (!%p9_p4) target bundleno = 1 (0x1), region = 59 }

</bundles_post_ra>
